<compile_context>
chip_gen: v6e
topology: v6e:2x2x1
jax: 0.10.0
libtpu: 0.0.40
codegen_flags: <defaults>
</compile_context>

<pallas_src>
import math

import jax
import jax.numpy as jnp
from jax.experimental import pallas as pl
from jax.experimental.pallas import tpu as pltpu

LOG2 = math.log(2.0)


def _ssp(x):
    # "ssp" activation from orb_models: shifted softplus = softplus(x) - log(2)
    return jnp.maximum(x, 0.0) + jnp.log1p(jnp.exp(-jnp.abs(x))) - LOG2


def _round_up(x, m):
    return ((x + m - 1) // m) * m


def _vmem_capacity_bytes():
    """Generation-aware VMEM capacity (fallback: v7x's 64 MiB, the smallest)."""
    try:
        return int(pltpu.get_tpu_info().vmem_capacity_bytes)
    except Exception:
        return 64 * 1024 * 1024


def graph_head_forward(node_features, n_node, params, *,
                       node_aggregation="mean", tile_n_max=4096, num_split=None,
                       debug_validate=False):
    """GraphHead.forward: returns raw predictions [n_graphs, target_dim]."""
    n_graphs = int(n_node.shape[0])
    n_nodes, latent_dim = (int(s) for s in node_features.shape)
    hidden_dim = int(params["w0"].shape[1])
    target_dim = int(params["w2"].shape[1])

    if node_features.dtype != jnp.float32:
        node_features = node_features.astype(jnp.float32)

    # ---- static sizing -------------------------------------------------------------
    g_pad = _round_up(n_graphs, 8)                 # sublane-aligned graph rows
    d_vmem = _round_up(latent_dim, 128)            # VMEM lane footprint of one x row
    h_pad = _round_up(hidden_dim, 128)             # lane-dense MLP widths (tiny params)
    o_pad = _round_up(target_dim, 128)

    vmem_cap = _vmem_capacity_bytes()
    vmem_soft_cap = int(0.75 * vmem_cap)           # headroom for compiler scratch/sems

    # tile_n from the VMEM budget: double-buffered x tile dominates.
    bytes_per_row = 2 * d_vmem * 4 + 2 * 4 + g_pad * 4
    tile_n_budget = max(128, ((vmem_cap // 4) // bytes_per_row) // 128 * 128)
    tile_n = max(128, min(tile_n_max, tile_n_budget, _round_up(n_nodes, 128)))
    tile_n = _round_up(tile_n, 128)

    num_tiles = -(-n_nodes // tile_n)
    if num_split is None:
        num_split = 2 if num_tiles >= 2 else 1     # fills both v7x TCs; harmless elsewhere
    num_split = max(1, min(num_split, num_tiles))
    tiles_per_split = -(-num_tiles // num_split)

    # ---- host-side glue (small scalar arrays only; no node_features copy) -----------
    if debug_validate:
        assert int(jnp.sum(n_node)) == n_nodes, "sum(n_node) must equal n_nodes"
    # NOTE: jnp.repeat(..., total_repeat_length) silently truncates/pads when
    # sum(n_node) != n_nodes — enable debug_validate when constructing new batches.
    seg = jnp.repeat(jnp.arange(n_graphs, dtype=jnp.int32), n_node,
                     total_repeat_length=n_nodes)
    seg_len = num_tiles * tile_n
    seg = jnp.pad(seg, (0, seg_len - n_nodes), constant_values=-1)[None, :]  # [1, seg_len]

    nn_f = n_node.astype(jnp.float32)
    if node_aggregation == "mean":
        scale = jnp.where(nn_f > 0, 1.0 / jnp.maximum(nn_f, 1.0), 0.0)       # empty-graph guard
    elif node_aggregation == "sum":
        scale = jnp.ones_like(nn_f)
    else:
        raise ValueError(node_aggregation)
    scale = jnp.pad(scale, (0, g_pad - n_graphs))[:, None]                   # [g_pad, 1]

    # MLP params zero-padded to lane-dense output widths (tiny arrays; padding is inert).
    w0 = jnp.pad(params["w0"], ((0, 0), (0, h_pad - hidden_dim)))
    b0 = jnp.pad(params["b0"], ((0, 0), (0, h_pad - hidden_dim)))
    w1 = jnp.pad(params["w1"], ((0, h_pad - hidden_dim), (0, h_pad - hidden_dim)))
    b1 = jnp.pad(params["b1"], ((0, 0), (0, h_pad - hidden_dim)))
    w2 = jnp.pad(params["w2"], ((0, h_pad - hidden_dim), (0, o_pad - target_dim)))
    b2 = jnp.pad(params["b2"], ((0, 0), (0, o_pad - target_dim)))

    # ---- Kernel A: streamed segment-sum into per-split partial slabs ----------------
    def agg_kernel(seg_ref, x_ref, part_ref, ids_ref):
        c = pl.program_id(0)      # split (TensorCore) index
        t = pl.program_id(1)      # tile within split (reduction axis)

        @pl.when(t == 0)
        def _init():
            part_ref[...] = jnp.zeros_like(part_ref)
            # graph-id iota hoisted out of the per-step body (filled once per split)
            ids_ref[...] = jax.lax.broadcasted_iota(jnp.int32, ids_ref.shape, 0)

        tile_idx = c * tiles_per_split + t
        onehot = (ids_ref[...] == seg_ref[...]).astype(jnp.float32)      # [g_pad, tile_n]
        # Zero OOB / phantom-tile rows (handles ragged tail; robust to stale NaN bits).
        rows = tile_idx * tile_n + jax.lax.broadcasted_iota(jnp.int32, (tile_n, 1), 0)
        x = jnp.where(rows < n_nodes, x_ref[...], 0.0)                   # [tile_n, latent]
        part_ref[...] += jnp.dot(onehot, x, preferred_element_type=jnp.float32)

    def _tile_index(c, t):
        # Clamp phantom tiles (when num_tiles is not a multiple of num_split) to the
        # last real tile; their contribution is masked to zero in-kernel.
        return jnp.minimum(c * tiles_per_split + t, num_tiles - 1)

    grid_spec = pltpu.PrefetchScalarGridSpec(
        num_scalar_prefetch=0,
        grid=(num_split, tiles_per_split),
        in_specs=[
            pl.BlockSpec((1, tile_n), lambda c, t: (0, _tile_index(c, t))),       # seg ids
            pl.BlockSpec((tile_n, latent_dim), lambda c, t: (_tile_index(c, t), 0)),  # x tile (natural last dim, f32)
        ],
        out_specs=pl.BlockSpec((g_pad, latent_dim), lambda c, t: (c, 0)),         # per-split partial
        scratch_shapes=[pltpu.VMEM((g_pad, tile_n), jnp.int32)],                  # hoisted graph-id iota
    )

    est_bytes = (2 * (tile_n * d_vmem * 4 + 8 * tile_n * 4)       # double-buffered x + seg
                 + g_pad * tile_n * 4                             # ids scratch
                 + 2 * g_pad * d_vmem * 4)                        # partial out
    vmem_limit = int(min(max(2 * est_bytes, 32 * 1024 * 1024), vmem_soft_cap))

    partials = pl.pallas_call(
        agg_kernel,
        out_shape=jax.ShapeDtypeStruct((num_split * g_pad, latent_dim), jnp.float32),
        grid_spec=grid_spec,
        compiler_params=pltpu.CompilerParams(
            dimension_semantics=("parallel", "arbitrary"),
            vmem_limit_bytes=vmem_limit),
    )(seg, node_features)

    # ---- Kernel B: combine partials + fused MLP epilogue (gridless, tiny) -----------
    def combine_mlp_kernel(part_ref, scale_ref, w0_ref, b0_ref, w1_ref, b1_ref,
                           w2_ref, b2_ref, out_ref):
        agg = part_ref[pl.ds(0, g_pad), :]
        for s in range(1, num_split):
            agg = agg + part_ref[pl.ds(s * g_pad, g_pad), :]
        agg = agg * scale_ref[...]                                   # 'mean' scale (or 1.0)
        h = _ssp(jnp.dot(agg, w0_ref[...], preferred_element_type=jnp.float32) + b0_ref[...])
        h = _ssp(jnp.dot(h, w1_ref[...], preferred_element_type=jnp.float32) + b1_ref[...])
        pred = jnp.dot(h, w2_ref[...], preferred_element_type=jnp.float32) + b2_ref[...]
        grow = jax.lax.broadcasted_iota(jnp.int32, (g_pad, 1), 0)
        out_ref[...] = jnp.where(grow < n_graphs, pred, 0.0).astype(out_ref.dtype)

    out = pl.pallas_call(
        combine_mlp_kernel,
        out_shape=jax.ShapeDtypeStruct((g_pad, o_pad), jnp.float32),
    )(partials, scale, w0, b0, w1, b1, w2, b2)

    return out[:n_graphs, :target_dim]


def _init_linear(key, fan_in, fan_out):
    """Deterministic init mimicking torch.nn.Linear default (uniform +-1/sqrt(fan_in))."""
    kw, kb = jax.random.split(key)
    bound = 1.0 / math.sqrt(fan_in)
    w = jax.random.uniform(kw, (fan_in, fan_out), jnp.float32, -bound, bound)
    b = jax.random.uniform(kb, (1, fan_out), jnp.float32, -bound, bound)
    return w, b


def _reference(node_features, n_node, params):
    """Plain-JAX (f32) reference of GraphHead.forward for a correctness check."""
    seg_ids = jnp.repeat(jnp.arange(n_node.shape[0], dtype=jnp.int32), n_node,
                         total_repeat_length=node_features.shape[0])
    sums = jax.ops.segment_sum(node_features, seg_ids, num_segments=n_node.shape[0])
    agg = sums / jnp.maximum(n_node, 1)[:, None].astype(jnp.float32)
    h = _ssp(agg @ params["w0"] + params["b0"])
    h = _ssp(h @ params["w1"] + params["b1"])
    return h @ params["w2"] + params["b2"]


if __name__ == "__main__":
    # GraphHead(latent_dim=32, num_mlp_layers=2, mlp_hidden_dim=32, target.dim=1,
    #           node_aggregation='mean', activation='ssp')
    latent_dim = 32
    mlp_hidden_dim = 32
    target_dim = 1           # real-valued scalar graph target

    key = jax.random.PRNGKey(0)
    k_x, k0, k1, k2, k_x2 = jax.random.split(key, 5)

    w0, b0 = _init_linear(k0, latent_dim, mlp_hidden_dim)
    w1, b1 = _init_linear(k1, mlp_hidden_dim, mlp_hidden_dim)
    w2, b2 = _init_linear(k2, mlp_hidden_dim, target_dim)
    params = {"w0": w0, "b0": b0, "w1": w1, "b1": b1, "w2": w2, "b2": b2}

    # Case 1: tiny batch (2 graphs, 16 nodes) -> single tile, single split.
    n_node = jnp.array([7, 9], dtype=jnp.int32)
    node_features = jax.random.normal(k_x, (16, latent_dim), jnp.float32)
    pred = jax.block_until_ready(graph_head_forward(node_features, n_node, params))
    ref = _reference(node_features, n_node, params)
    assert pred.shape == (2, target_dim), pred.shape
    assert jnp.allclose(pred, ref, atol=1e-4, rtol=1e-4), (pred, ref)

    # Case 2: multi-tile, 2-way split, ragged tail (exercises clamped phantom tile + mask).
    n_node2 = jnp.array([100, 120, 81], dtype=jnp.int32)
    node_features2 = jax.random.normal(k_x2, (301, latent_dim), jnp.float32)
    pred2 = jax.block_until_ready(
        graph_head_forward(node_features2, n_node2, params, tile_n_max=128))
    ref2 = _reference(node_features2, n_node2, params)
    assert pred2.shape == (3, target_dim), pred2.shape
    assert jnp.allclose(pred2, ref2, atol=1e-4, rtol=1e-4), (pred2, ref2)

    # TODO(synk): loss()/predict() paths (ScalarNormalizer inverse, BCE/CE metrics, dropout)
    # are training/inference glue outside the forward hot path and are not kernelized.
    print("KERNEL_OK")
</pallas_src>

<mosaic_0001>
module attributes {stable_mosaic.version = 11 : i64} {
  func.func @agg_kernel(%arg0: i32, %arg1: i32, %arg2: memref<1x128xi32, #tpu.memory_space<vmem>>, %arg3: memref<128x32xf32, #tpu.memory_space<vmem>>, %arg4: memref<8x32xf32, #tpu.memory_space<vmem>>, %arg5: memref<8x128xi32, #tpu.memory_space<vmem>>) attributes {dimension_semantics = [#tpu.dimension_semantics<parallel>, #tpu.dimension_semantics<arbitrary>], iteration_bounds = array<i64: 1, 1>, scalar_prefetch = 0 : i64, scratch_operands = 1 : i64, tpu.core_type = #tpu.core_type<tc>, window_params = [{transform_indices = @transform_0, window_bounds = array<i64: 1, 128>}, {transform_indices = @transform_1, window_bounds = array<i64: 128, 32>}, {transform_indices = @transform_2, window_bounds = array<i64: 8, 32>}]} {
    %c0_i32 = arith.constant 0 : i32
    %0 = arith.cmpi eq, %arg1, %c0_i32 : i32
    %1 = arith.extui %0 : i1 to i32
    %c0_i32_0 = arith.constant 0 : i32
    %2 = arith.cmpi ne, %1, %c0_i32_0 : i32
    scf.if %2 {
      %cst_11 = arith.constant 0.000000e+00 : f32
      %26 = vector.broadcast %cst_11 : f32 to vector<8x32xf32>
      %c0_12 = arith.constant 0 : index
      %c0_13 = arith.constant 0 : index
      %27 = vector.load %arg4[%c0_12, %c0_13] : memref<8x32xf32, #tpu.memory_space<vmem>>, vector<8x32xf32>
      tpu.vector_store %arg4[%c0_12, %c0_13], %26 {strides = array<i32>} : memref<8x32xf32, #tpu.memory_space<vmem>>, vector<8x32xf32>,
      %28 = tpu.iota {dimensions = array<i32: 0>} : vector<8x128xi32>
      %c0_14 = arith.constant 0 : index
      %c0_15 = arith.constant 0 : index
      %29 = vector.load %arg5[%c0_14, %c0_15] : memref<8x128xi32, #tpu.memory_space<vmem>>, vector<8x128xi32>
      tpu.vector_store %arg5[%c0_14, %c0_15], %28 {strides = array<i32>} : memref<8x128xi32, #tpu.memory_space<vmem>>, vector<8x128xi32>,
    } else {
    }
    %c1_i32 = arith.constant 1 : i32
    %3 = arith.muli %arg0, %c1_i32 : i32
    %4 = arith.addi %3, %arg1 : i32
    %c0 = arith.constant 0 : index
    %c0_1 = arith.constant 0 : index
    %5 = vector.load %arg5[%c0, %c0_1] : memref<8x128xi32, #tpu.memory_space<vmem>>, vector<8x128xi32>
    %c0_2 = arith.constant 0 : index
    %c0_3 = arith.constant 0 : index
    %6 = vector.load %arg2[%c0_2, %c0_3] : memref<1x128xi32, #tpu.memory_space<vmem>>, vector<1x128xi32>
    %7 = vector.broadcast %6 : vector<1x128xi32> to vector<8x128xi32>
    %8 = arith.cmpi eq, %5, %7 : vector<8x128xi32>
    %9 = arith.extui %8 : vector<8x128xi1> to vector<8x128xi32>
    %10 = arith.sitofp %9 : vector<8x128xi32> to vector<8x128xf32>
    %c128_i32 = arith.constant 128 : i32
    %11 = arith.muli %4, %c128_i32 : i32
    %12 = tpu.iota {dimensions = array<i32: 0>} : vector<128x1xi32>
    %13 = vector.broadcast %11 : i32 to vector<128x1xi32>
    %14 = arith.addi %13, %12 : vector<128x1xi32>
    %c16_i32 = arith.constant 16 : i32
    %15 = vector.broadcast %c16_i32 : i32 to vector<128x1xi32>
    %16 = arith.cmpi slt, %14, %15 : vector<128x1xi32>
    %c0_4 = arith.constant 0 : index
    %c0_5 = arith.constant 0 : index
    %17 = vector.load %arg3[%c0_4, %c0_5] : memref<128x32xf32, #tpu.memory_space<vmem>>, vector<128x32xf32>
    %cst = arith.constant 0.000000e+00 : f32
    %18 = vector.shape_cast %16 : vector<128x1xi1> to vector<128x1xi1>
    %19 = vector.broadcast %18 : vector<128x1xi1> to vector<128x32xi1>
    %20 = vector.broadcast %cst : f32 to vector<128x32xf32>
    %21 = arith.select %19, %17, %20 : vector<128x32xi1>, vector<128x32xf32>
    %c0_6 = arith.constant 0 : index
    %c0_7 = arith.constant 0 : index
    %22 = vector.load %arg4[%c0_6, %c0_7] : memref<8x32xf32, #tpu.memory_space<vmem>>, vector<8x32xf32>
    %cst_8 = arith.constant dense<0.000000e+00> : vector<8x32xf32>
    %23 = tpu.matmul %10, %21, %cst_8 {dimension_numbers = #tpu.dot_dimension_numbers<[1], [0], [0], [1], [0, 0, 1, 1], [], []>} : vector<8x128xf32>, vector<128x32xf32>, vector<8x32xf32> -> vector<8x32xf32>
    %24 = arith.addf %22, %23 : vector<8x32xf32>
    %c0_9 = arith.constant 0 : index
    %c0_10 = arith.constant 0 : index
    %25 = vector.load %arg4[%c0_9, %c0_10] : memref<8x32xf32, #tpu.memory_space<vmem>>, vector<8x32xf32>
    tpu.vector_store %arg4[%c0_9, %c0_10], %24 {strides = array<i32>} : memref<8x32xf32, #tpu.memory_space<vmem>>, vector<8x32xf32>,
    return
  }
  func.func @transform_0(%arg0: i32, %arg1: i32) -> (i32, i32) {
    %c1_i32 = arith.constant 1 : i32
    %0 = arith.muli %arg0, %c1_i32 : i32
    %1 = arith.addi %0, %arg1 : i32
    %c0_i32 = arith.constant 0 : i32
    %2 = arith.minsi %1, %c0_i32 : i32
    %c0_i32_0 = arith.constant 0 : i32
    %c0_i32_1 = arith.constant 0 : i32
    return %c0_i32_0, %2 : i32, i32
  }
  func.func @transform_1(%arg0: i32, %arg1: i32) -> (i32, i32) {
    %c1_i32 = arith.constant 1 : i32
    %0 = arith.muli %arg0, %c1_i32 : i32
    %1 = arith.addi %0, %arg1 : i32
    %c0_i32 = arith.constant 0 : i32
    %2 = arith.minsi %1, %c0_i32 : i32
    %c0_i32_0 = arith.constant 0 : i32
    %c0_i32_1 = arith.constant 0 : i32
    return %2, %c0_i32_0 : i32, i32
  }
  func.func @transform_2(%arg0: i32, %arg1: i32) -> (i32, i32) {
    %c0_i32 = arith.constant 0 : i32
    %c0_i32_0 = arith.constant 0 : i32
    return %arg0, %c0_i32 : i32, i32
  }
}

</mosaic_0001>

<bundles_post_ra>
// kernel: tpu_custom_call.1
= control target key start
LH: loop header
LB: loop body
LE: loop exit
PB: predicated region body
PF: predicated region fallthrough
CT: control target
= control target key end

     0   :  { %7 = vsyncpa [#allocation4], 0  ;;  %s411_s0 = inlined_call_operand.hbm [shape: s32[1,128], index: 0, kind: input, shape index: {}]   ;;  %s412_s1 = inlined_call_operand.hbm [shape: f32[16,32], index: 1, kind: input, shape index: {}]   ;;  %s413_s2 = inlined_call_operand.hbm [shape: f32[8,32], index: 2, kind: output, shape index: {}]  }
   0x1   :  { %8 = vsyncpa [#allocation7], 0 }
   0x2   :  { %9 = vsyncpa [#allocation5], 0  ;;  %s377_s9 = smov [#allocation3]  }
   0x3   :  { %s21_s10 = sshll.u32 %s377_s9, 4  ;;  %s22_s10 = int_to_ptr.vmem [resolvable:$true] %s21_s10 }
   0x4   :  { %s319_s11 = scalar_lea.vmem %s22_s10, 16  ;;  %s323_s12 = scalar_lea.vmem %s22_s10, 32 }
   0x5   :  { %p320_p0 = scmp.ne.s32.totalorder %s22_s10, %s319_s11  ;;  %p324_p1 = scmp.lt.s32.totalorder %s22_s10, %s22_s10 }
   0x6   :  { %p325_p2 = scmp.lt.s32.totalorder %s323_s12, %s319_s11 }
   0x8   :  { %p326_p3 = por %p325_p2, %p324_p1 }
   0xa   :  { %p327_p4 = pnand %p326_p3, %p320_p0 }
   0xc   :  { %330 = shalt.err (!%p327_p4)
}
   0xd   :  { %24 = dma.hbm_to_vmem [thread:$0]  %s411_s0, 16, %s22_s10, [#allocation4]  }
   0xe   :  { %35 = vsyncadd [#allocation7], 1792  ;;  %s378_s15 = smov [#allocation6]  }
   0xf   :  { %s40_s16 = sshll.u32 %s378_s15, 4  ;;  %s41_s16 = int_to_ptr.vmem [resolvable:$true] %s40_s16 }
  0x10   :  { %s339_s17 = scalar_lea.vmem %s41_s16, 256  ;;  %s343_s18 = scalar_lea.vmem %s41_s16, 2048 }
  0x11   :  { %p340_p5 = scmp.ne.s32.totalorder %s41_s16, %s339_s17  ;;  %p344_p6 = scmp.lt.s32.totalorder %s41_s16, %s41_s16 }
  0x12   :  { %p345_p7 = scmp.lt.s32.totalorder %s343_s18, %s339_s17 }
  0x14   :  { %p346_p8 = por %p345_p7, %p344_p6 }
  0x16   :  { %p347_p9 = pnand %p346_p8, %p340_p5 }
  0x18   :  { %350 = shalt.err (!%p347_p9)
}
  0x19   :  { %s379_s19 = smov 128   ;;  %s380_s20 = smov 8  }
  0x1a   :  { %46 = dma.hbm_to_vmem [thread:$0]  %s412_s1, 256, %s41_s16, [#allocation7], %s379_s19, %s379_s19, %s380_s20  }
  0x1b   :  { %371 = dma.done.wait [#allocation4], 16  }
  0x1c   :  { %372 = vsyncadd [#allocation4], 4294967280 }
  0x1d   :  { %373 = dma.done.wait [#allocation7], 2048  }
  0x1e   :  { %374 = vsyncadd [#allocation7], 4294965248  ;;  %vm66_vm0 = vcmask 261120   ;;  %v68_v0 = vlaneseq  ;;  %v381_v1 = vmov 0.0   ;;  %vm382_vm1 = vmmov 0   ;;  %v133_v3 = vld [vmem:[#allocation6 + $0x8] sm:$0xff] }
  0x1f   :  { %67 = vst.msk [vmem:[#allocation8] sm:$0xff] %vm66_vm0, %v381_v1  ;;  %296 = vmatprep.subr.mxu0 %v381_v1  ;;  %300 = vmatprep.mubr.msk.f32.mxu0 %vm382_vm1, %v381_v1  ;;  %v132_v4 = vld [vmem:[#allocation6] sm:$0xff]  ;;  %v290_v5 = vld [vmem:[#allocation3] ss:$0 sm:$0xff]  ;;  %v383_v6 = vmov 1.0   ;;  %s384_s0 = smov [#allocation8]  }
  0x20   :  { %v69_v2 = vshrl.u32 %v68_v0, 7  ;;  %297 = vmatpush3.msra.mxu0 %v133_v3  ;;  %s276_s1 = sshll.u32 %s384_s0, 4  ;;  %s277_s1 = int_to_ptr.vmem [resolvable:$true] %s276_s1 }
  0x21   :  { %298 = vmatprep.subr.mxu0 %v381_v1  ;;  %s351_s23 = scalar_lea.vmem %s277_s1, 128  ;;  %p356_p11 = scmp.lt.s32.totalorder %s277_s1, %s277_s1 }
  0x22   :  { %vm78_vm2 = vcmp.eq.s32.totalorder %v69_v2, %v290_v5  ;;  %299 = vmatpush3.msra.mxu0 %v132_v4  ;;  %p352_p10 = scmp.ne.s32.totalorder %s277_s1, %s351_s23  ;;  %p357_p12 = scmp.lt.s32.totalorder %s351_s23, %s351_s23 }
  0x23   :  { %301 = vmatmul.mubr.msk.f32.vlgmr.msra.gmra.mxu0 %vm78_vm2, %v383_v6 }
  0x24   :  { %p358_p13 = por %p357_p12, %p356_p11 }
  0x26   :  { %v196_v7 = vld [vmem:[#allocation8] sm:$0xff]  ;;  %p359_p0 = pnand %p358_p13, %p352_p10 }
  0xe3   :  { %v263_v8 = vpop.f32.mrf.mxu0 }
  0xe4   :  { %v267_v9 = vadd.f32 %v263_v8, %v196_v7 }
  0xe5   :  { %v302_v10 = vpop.f32.mrf.mxu0 }
  0xe6   :  { %269 = vst.msk [vmem:[#allocation8] sm:$0xff] %vm66_vm0, %v267_v9 }
  0xe7   :  { %362 = shalt.err (!%p359_p0)
}
  0xe8   :  { %279 = dma.vmem_to_hbm [thread:$0]  %s277_s1, 128, %s413_s2, [#allocation5]  }
  0xe9   :  { %375 = dma.done.wait [#allocation5], 128  }
  0xea   :  { %376 = vsyncadd [#allocation5], 4294967168 }
  0xeb   :  { %283 = vsyncpa [#allocation4], 1 }
  0xec   :  { %284 = vsyncpa [#allocation7], 1 }
  0xed   :  { %285 = vsyncpa [#allocation5], 1 }

</bundles_post_ra>
